<compile_context>
chip_gen: v7x
topology: tpu7x:2x2x1
jax: 0.10.0
libtpu: 0.0.40
codegen_flags: <defaults>
</compile_context>

<pallas_src>
import functools
import math

import jax
import jax.numpy as jnp
import numpy as np
from jax.experimental import pallas as pl
from jax.experimental.pallas import tpu as pltpu


def _bilinear_matrix(out_size: int, in_size: int) -> np.ndarray:
    """1-D interpolation weights matching F.interpolate(mode='bilinear',
    align_corners=False) along one axis.  Shape (out_size, in_size)."""
    if out_size == in_size:
        return np.eye(out_size, dtype=np.float32)
    scale = in_size / out_size
    dst = np.arange(out_size, dtype=np.float64)
    src = np.maximum((dst + 0.5) * scale - 0.5, 0.0)
    i0 = np.minimum(np.floor(src).astype(np.int64), in_size - 1)
    i1 = np.minimum(i0 + 1, in_size - 1)
    w1 = (src - i0).astype(np.float32)
    w0 = 1.0 - w1
    a = np.zeros((out_size, in_size), dtype=np.float32)
    rows = np.arange(out_size)
    np.add.at(a, (rows, i0), w0)
    np.add.at(a, (rows, i1), w1)
    return a


def _vmem_limit_bytes() -> int:
    """Conservative per-generation scoped VMEM limit (~3/4 of capacity)."""
    cap = 64 << 20  # safe assumption (v7x per-TC VMEM)
    try:
        info = pltpu.get_tpu_info()
        cap = int(getattr(info, "vmem_capacity_bytes", cap) or cap)
    except Exception:
        pass
    return int(min((cap * 3) // 4, 100 << 20))


def _sd_loss_kernel(yp_ref, yt_ref, yr_ref, b1_ref, b2_ref, out_ref, *,
                    valid_b, bt):
    x = yp_ref[...].astype(jnp.float32)                   # (bt, hwp) logits, f32
    t = yt_ref[...].astype(jnp.bfloat16)                  # (bt, hwt) soft labels
    r = jax.nn.sigmoid(yr_ref[...].astype(jnp.float32)).astype(jnp.bfloat16)

    # Blended upsampled target: two bf16 MXU matmuls with f32 accumulate,
    # batch folded into the M dimension; alpha folded into b1/b2.
    y = (jnp.dot(t, b1_ref[...], preferred_element_type=jnp.float32) +
         jnp.dot(r, b2_ref[...], preferred_element_type=jnp.float32))

    # Numerically-stable BCEWithLogits: max(x,0) - x*y + log(1 + exp(-|x|))
    bce = jnp.maximum(x, 0.0) - x * y + jnp.log(1.0 + jnp.exp(-jnp.abs(x)))

    def _reduce(vals):
        # Sublane-only reduce -> lane-dense (1, hwp) partial-sum row.
        return jnp.sum(vals, axis=0, keepdims=True)

    if valid_b % bt != 0:
        # Ragged last chunk exists: pay the row mask ONLY on the last step
        # (over-read rows in the edge block contain garbage, not zeros).
        last = pl.num_programs(0) - 1

        @pl.when(pl.program_id(0) != last)
        def _():
            out_ref[...] = _reduce(bce)

        @pl.when(pl.program_id(0) == last)
        def _():
            rows = (pl.program_id(0) * bt +
                    jax.lax.broadcasted_iota(jnp.int32, (bt, 1), 0))
            out_ref[...] = _reduce(jnp.where(rows < valid_b, bce, 0.0))
    else:
        out_ref[...] = _reduce(bce)


def sd_loss_pallas(y_pred, y_true, y_ref, alpha, reduction="mean"):
    assert reduction in ("mean", "sum")
    N, C, Hp, Wp = y_pred.shape
    _, _, Ht, Wt = y_true.shape
    _, _, Hr, Wr = y_ref.shape

    # PyTorch: scale_factor = y_pred.shape[-1] / target.shape[-1],
    # output spatial size = floor(in * scale) for both H and W.
    scale1 = Wp / Wt
    scale2 = Wp / Wr
    assert (int(math.floor(Ht * scale1)), int(math.floor(Wt * scale1))) == (Hp, Wp)
    assert (int(math.floor(Hr * scale2)), int(math.floor(Wr * scale2))) == (Hp, Wp)

    hwp, hwt, hwr = Hp * Wp, Ht * Wt, Hr * Wr

    # Dense flattened bilinear operators with the alpha blend folded in,
    # stored bf16 (MXU-native, half the VMEM footprint of f32).
    # TODO(synk): for large spatial sizes switch to the separable two-pass
    # (W-pass batch-folded matmul + batched H-pass) form; the dense kron
    # operator is O(hwt*hwp) and caps usable resolution, especially on v7x.
    a1 = np.kron(_bilinear_matrix(Hp, Ht), _bilinear_matrix(Wp, Wt))  # (hwp, hwt)
    a2 = np.kron(_bilinear_matrix(Hp, Hr), _bilinear_matrix(Wp, Wr))  # (hwp, hwr)
    b1 = jnp.asarray((1.0 - float(alpha)) * a1.T, dtype=jnp.bfloat16)  # (hwt, hwp)
    b2 = jnp.asarray(float(alpha) * a2.T, dtype=jnp.bfloat16)          # (hwr, hwp)

    vmem_limit = _vmem_limit_bytes()
    op_bytes = 2 * hwp * (hwt + hwr)  # bf16 operators (single-buffered target)
    assert 2 * op_bytes <= int(vmem_limit * 0.4), (
        "dense kron upsample operators too large for VMEM; "
        "see TODO(synk) about the separable two-pass form")

    B = N * C
    # Keep native dtype in HBM (cast on the VMEM tile inside the kernel);
    # reshapes are free metadata changes.
    yp = y_pred.reshape(B, hwp)
    yt = y_true.reshape(B, hwt)
    yr = y_ref.reshape(B, hwr)

    # Batch-chunk size from the real VMEM budget: double-buffered inputs plus
    # f32/bf16 intermediates per row; operators counted (2x, worst case) on top.
    per_row = (2 * (yp.dtype.itemsize * hwp + yt.dtype.itemsize * hwt +
                    yr.dtype.itemsize * hwr) +
               4 * (3 * hwp + hwt + hwr))
    budget = int(vmem_limit * 0.6) - 2 * op_bytes
    bt_cap = max(8, min(2048, (budget // per_row) // 8 * 8))
    if B >= 16:
        # Keep >= 2 chunks so the "parallel" axis can shard across the two
        # TensorCores of a v7x megacore.
        bt = min(bt_cap, ((pl.cdiv(B, 2) + 7) // 8) * 8)
    else:
        bt = min(B, bt_cap)
    n_chunks = pl.cdiv(B, bt)
    # NOTE: no jnp.pad of the inputs (saves a full HBM read+write pass); the
    # ragged last chunk (if any) is masked inside the kernel on the last step.

    kernel = functools.partial(_sd_loss_kernel, valid_b=B, bt=bt)

    def _run(op_extra):
        return pl.pallas_call(
            kernel,
            out_shape=jax.ShapeDtypeStruct((n_chunks, hwp), jnp.float32),
            grid_spec=pltpu.PrefetchScalarGridSpec(
                num_scalar_prefetch=0,
                grid=(n_chunks,),
                in_specs=[
                    pl.BlockSpec((bt, hwp), lambda g: (g, 0)),
                    pl.BlockSpec((bt, hwt), lambda g: (g, 0)),
                    pl.BlockSpec((bt, hwr), lambda g: (g, 0)),
                    pl.BlockSpec((hwt, hwp), lambda g: (0, 0), **op_extra),
                    pl.BlockSpec((hwr, hwp), lambda g: (0, 0), **op_extra),
                ],
                out_specs=pl.BlockSpec((1, hwp), lambda g: (g, 0)),
            ),
            compiler_params=pltpu.CompilerParams(
                dimension_semantics=("parallel",),
                vmem_limit_bytes=int(vmem_limit),
            ),
        )(yp, yt, yr, b1, b2)

    try:
        # Operators are grid-invariant -> single-buffer them to save VMEM.
        partials = _run(dict(pipeline_mode=pl.Buffered(1)))
    except Exception:
        partials = _run({})  # fallback: default (double) buffering

    loss = jnp.sum(partials)
    if reduction == "mean":
        loss = loss / float(B * hwp)
    return loss


def sd_loss_reference(y_pred, y_true, y_ref, alpha, reduction="mean"):
    """Pure-JAX f32 reference using the same separable interpolation matrices."""
    N, C, Hp, Wp = y_pred.shape
    _, _, Ht, Wt = y_true.shape
    _, _, Hr, Wr = y_ref.shape
    a1h = jnp.asarray(_bilinear_matrix(Hp, Ht))
    a1w = jnp.asarray(_bilinear_matrix(Wp, Wt))
    a2h = jnp.asarray(_bilinear_matrix(Hp, Hr))
    a2w = jnp.asarray(_bilinear_matrix(Wp, Wr))
    yt_up = jnp.einsum("Oh,nchw,Pw->ncOP", a1h, y_true.astype(jnp.float32), a1w)
    yr_up = jnp.einsum("Oh,nchw,Pw->ncOP", a2h,
                       jax.nn.sigmoid(y_ref.astype(jnp.float32)), a2w)
    y = alpha * yr_up + (1.0 - alpha) * yt_up
    x = y_pred.astype(jnp.float32)
    bce = jnp.maximum(x, 0.0) - x * y + jnp.log(1.0 + jnp.exp(-jnp.abs(x)))
    return jnp.mean(bce) if reduction == "mean" else jnp.sum(bce)


if __name__ == "__main__":
    key = jax.random.PRNGKey(0)
    k1, k2, k3 = jax.random.split(key, 3)

    N, C = 2, 4
    Hp = Wp = 16          # prediction spatial size
    Ht = Wt = 8           # target spatial size    -> scale1 = 2.0
    Hr = Wr = 8           # reference spatial size -> scale2 = 2.0
    alpha = 0.3

    y_pred = jax.random.normal(k1, (N, C, Hp, Wp), dtype=jnp.float32)
    y_true = jax.random.uniform(k2, (N, C, Ht, Wt), dtype=jnp.float32)  # soft labels
    y_ref = jax.random.normal(k3, (N, C, Hr, Wr), dtype=jnp.float32)    # reference logits

    loss_kernel = jax.block_until_ready(
        sd_loss_pallas(y_pred, y_true, y_ref, alpha, reduction="mean"))
    loss_ref = jax.block_until_ready(
        sd_loss_reference(y_pred, y_true, y_ref, alpha, reduction="mean"))

    # bf16 MXU path for the blended target -> loosened tolerance vs f32 ref.
    assert np.allclose(np.asarray(loss_kernel), np.asarray(loss_ref),
                       rtol=1e-2, atol=1e-3), (loss_kernel, loss_ref)
    print("KERNEL_OK")
</pallas_src>

<mosaic_0001>
module attributes {stable_mosaic.version = 11 : i64} {
  func.func @_sd_loss_kernel(%arg0: i32, %arg1: memref<8x256xf32, #tpu.memory_space<vmem>>, %arg2: memref<8x64xf32, #tpu.memory_space<vmem>>, %arg3: memref<8x64xf32, #tpu.memory_space<vmem>>, %arg4: memref<64x256xbf16, #tpu.memory_space<vmem>>, %arg5: memref<64x256xbf16, #tpu.memory_space<vmem>>, %arg6: memref<1x256xf32, #tpu.memory_space<vmem>>) attributes {dimension_semantics = [#tpu.dimension_semantics<parallel>], iteration_bounds = array<i64: 1>, scalar_prefetch = 0 : i64, scratch_operands = 0 : i64, tpu.core_type = #tpu.core_type<tc>, window_params = [{transform_indices = @transform_0, window_bounds = array<i64: 8, 256>}, {transform_indices = @transform_1, window_bounds = array<i64: 8, 64>}, {transform_indices = @transform_2, window_bounds = array<i64: 8, 64>}, {pipeline_mode = #tpu.pipeline_mode<synchronous>, transform_indices = @transform_3, window_bounds = array<i64: 64, 256>}, {pipeline_mode = #tpu.pipeline_mode<synchronous>, transform_indices = @transform_4, window_bounds = array<i64: 64, 256>}, {transform_indices = @transform_5, window_bounds = array<i64: 1, 256>}]} {
    %c0 = arith.constant 0 : index
    %c0_0 = arith.constant 0 : index
    %0 = vector.load %arg1[%c0, %c0_0] : memref<8x256xf32, #tpu.memory_space<vmem>>, vector<8x256xf32>
    %c0_1 = arith.constant 0 : index
    %c0_2 = arith.constant 0 : index
    %1 = vector.load %arg2[%c0_1, %c0_2] : memref<8x64xf32, #tpu.memory_space<vmem>>, vector<8x64xf32>
    %2 = arith.truncf %1 : vector<8x64xf32> to vector<8x64xbf16>
    %c0_3 = arith.constant 0 : index
    %c0_4 = arith.constant 0 : index
    %3 = vector.load %arg3[%c0_3, %c0_4] : memref<8x64xf32, #tpu.memory_space<vmem>>, vector<8x64xf32>
    %4 = arith.negf %3 : vector<8x64xf32>
    %5 = math.exp %4 : vector<8x64xf32>
    %cst = arith.constant 1.000000e+00 : f32
    %6 = vector.broadcast %cst : f32 to vector<8x64xf32>
    %7 = arith.addf %6, %5 : vector<8x64xf32>
    %8 = arith.divf %6, %7 : vector<8x64xf32>
    %9 = arith.truncf %8 : vector<8x64xf32> to vector<8x64xbf16>
    %c0_5 = arith.constant 0 : index
    %c0_6 = arith.constant 0 : index
    %10 = vector.load %arg4[%c0_5, %c0_6] : memref<64x256xbf16, #tpu.memory_space<vmem>>, vector<64x256xbf16>
    %cst_7 = arith.constant dense<0.000000e+00> : vector<8x256xf32>
    %11 = tpu.matmul %2, %10, %cst_7 {dimension_numbers = #tpu.dot_dimension_numbers<[1], [0], [0], [1], [0, 0, 1, 1], [], []>} : vector<8x64xbf16>, vector<64x256xbf16>, vector<8x256xf32> -> vector<8x256xf32>
    %c0_8 = arith.constant 0 : index
    %c0_9 = arith.constant 0 : index
    %12 = vector.load %arg5[%c0_8, %c0_9] : memref<64x256xbf16, #tpu.memory_space<vmem>>, vector<64x256xbf16>
    %cst_10 = arith.constant dense<0.000000e+00> : vector<8x256xf32>
    %13 = tpu.matmul %9, %12, %cst_10 {dimension_numbers = #tpu.dot_dimension_numbers<[1], [0], [0], [1], [0, 0, 1, 1], [], []>} : vector<8x64xbf16>, vector<64x256xbf16>, vector<8x256xf32> -> vector<8x256xf32>
    %14 = arith.addf %11, %13 : vector<8x256xf32>
    %cst_11 = arith.constant 0.000000e+00 : f32
    %15 = vector.broadcast %cst_11 : f32 to vector<8x256xf32>
    %16 = arith.maximumf %0, %15 : vector<8x256xf32>
    %17 = arith.mulf %0, %14 : vector<8x256xf32>
    %18 = arith.subf %16, %17 : vector<8x256xf32>
    %19 = math.absf %0 : vector<8x256xf32>
    %cst_12 = arith.constant 0.000000e+00 : f32
    %20 = vector.broadcast %cst_12 : f32 to vector<8x256xf32>
    %21 = arith.subf %20, %19 : vector<8x256xf32>
    %22 = math.exp %21 : vector<8x256xf32>
    %cst_13 = arith.constant 1.000000e+00 : f32
    %23 = vector.broadcast %cst_13 : f32 to vector<8x256xf32>
    %24 = arith.addf %23, %22 : vector<8x256xf32>
    %25 = math.log %24 : vector<8x256xf32>
    %26 = arith.addf %18, %25 : vector<8x256xf32>
    %cst_14 = arith.constant dense<0.000000e+00> : vector<256xf32>
    %27 = vector.multi_reduction <add>, %26, %cst_14 [0] : vector<8x256xf32> to vector<256xf32>
    %28 = vector.shape_cast %27 : vector<256xf32> to vector<1x256xf32>
    %c0_15 = arith.constant 0 : index
    %c0_16 = arith.constant 0 : index
    %29 = vector.load %arg6[%c0_15, %c0_16] : memref<1x256xf32, #tpu.memory_space<vmem>>, vector<1x256xf32>
    tpu.vector_store %arg6[%c0_15, %c0_16], %28 {strides = array<i32>} : memref<1x256xf32, #tpu.memory_space<vmem>>, vector<1x256xf32>,
    return
  }
  func.func @transform_0(%arg0: i32) -> (i32, i32) {
    %c0_i32 = arith.constant 0 : i32
    %c0_i32_0 = arith.constant 0 : i32
    return %arg0, %c0_i32 : i32, i32
  }
  func.func @transform_1(%arg0: i32) -> (i32, i32) {
    %c0_i32 = arith.constant 0 : i32
    %c0_i32_0 = arith.constant 0 : i32
    return %arg0, %c0_i32 : i32, i32
  }
  func.func @transform_2(%arg0: i32) -> (i32, i32) {
    %c0_i32 = arith.constant 0 : i32
    %c0_i32_0 = arith.constant 0 : i32
    return %arg0, %c0_i32 : i32, i32
  }
  func.func @transform_3(%arg0: i32) -> (i32, i32) {
    %c0_i32 = arith.constant 0 : i32
    %c0_i32_0 = arith.constant 0 : i32
    %c0_i32_1 = arith.constant 0 : i32
    return %c0_i32, %c0_i32_0 : i32, i32
  }
  func.func @transform_4(%arg0: i32) -> (i32, i32) {
    %c0_i32 = arith.constant 0 : i32
    %c0_i32_0 = arith.constant 0 : i32
    %c0_i32_1 = arith.constant 0 : i32
    return %c0_i32, %c0_i32_0 : i32, i32
  }
  func.func @transform_5(%arg0: i32) -> (i32, i32) {
    %c0_i32 = arith.constant 0 : i32
    %c0_i32_0 = arith.constant 0 : i32
    return %arg0, %c0_i32 : i32, i32
  }
}

module attributes {stable_mosaic.version = 11 : i64} {
  func.func @_sd_loss_kernel(%arg0: i32, %arg1: memref<8x256xf32, #tpu.memory_space<vmem>>, %arg2: memref<8x64xf32, #tpu.memory_space<vmem>>, %arg3: memref<8x64xf32, #tpu.memory_space<vmem>>, %arg4: memref<64x256xbf16, #tpu.memory_space<vmem>>, %arg5: memref<64x256xbf16, #tpu.memory_space<vmem>>, %arg6: memref<1x256xf32, #tpu.memory_space<vmem>>) attributes {dimension_semantics = [#tpu.dimension_semantics<parallel>], iteration_bounds = array<i64: 1>, scalar_prefetch = 0 : i64, scratch_operands = 0 : i64, tpu.core_type = #tpu.core_type<tc>, window_params = [{transform_indices = @transform_0, window_bounds = array<i64: 8, 256>}, {transform_indices = @transform_1, window_bounds = array<i64: 8, 64>}, {transform_indices = @transform_2, window_bounds = array<i64: 8, 64>}, {pipeline_mode = #tpu.pipeline_mode<synchronous>, transform_indices = @transform_3, window_bounds = array<i64: 64, 256>}, {pipeline_mode = #tpu.pipeline_mode<synchronous>, transform_indices = @transform_4, window_bounds = array<i64: 64, 256>}, {transform_indices = @transform_5, window_bounds = array<i64: 1, 256>}]} {
    %c0 = arith.constant 0 : index
    %c0_0 = arith.constant 0 : index
    %0 = vector.load %arg1[%c0, %c0_0] : memref<8x256xf32, #tpu.memory_space<vmem>>, vector<8x256xf32>
    %c0_1 = arith.constant 0 : index
    %c0_2 = arith.constant 0 : index
    %1 = vector.load %arg2[%c0_1, %c0_2] : memref<8x64xf32, #tpu.memory_space<vmem>>, vector<8x64xf32>
    %2 = arith.truncf %1 : vector<8x64xf32> to vector<8x64xbf16>
    %c0_3 = arith.constant 0 : index
    %c0_4 = arith.constant 0 : index
    %3 = vector.load %arg3[%c0_3, %c0_4] : memref<8x64xf32, #tpu.memory_space<vmem>>, vector<8x64xf32>
    %4 = arith.negf %3 : vector<8x64xf32>
    %5 = math.exp %4 : vector<8x64xf32>
    %cst = arith.constant 1.000000e+00 : f32
    %6 = vector.broadcast %cst : f32 to vector<8x64xf32>
    %7 = arith.addf %6, %5 : vector<8x64xf32>
    %8 = arith.divf %6, %7 : vector<8x64xf32>
    %9 = arith.truncf %8 : vector<8x64xf32> to vector<8x64xbf16>
    %c0_5 = arith.constant 0 : index
    %c0_6 = arith.constant 0 : index
    %10 = vector.load %arg4[%c0_5, %c0_6] : memref<64x256xbf16, #tpu.memory_space<vmem>>, vector<64x256xbf16>
    %cst_7 = arith.constant dense<0.000000e+00> : vector<8x256xf32>
    %11 = tpu.matmul %2, %10, %cst_7 {dimension_numbers = #tpu.dot_dimension_numbers<[1], [0], [0], [1], [0, 0, 1, 1], [], []>} : vector<8x64xbf16>, vector<64x256xbf16>, vector<8x256xf32> -> vector<8x256xf32>
    %c0_8 = arith.constant 0 : index
    %c0_9 = arith.constant 0 : index
    %12 = vector.load %arg5[%c0_8, %c0_9] : memref<64x256xbf16, #tpu.memory_space<vmem>>, vector<64x256xbf16>
    %cst_10 = arith.constant dense<0.000000e+00> : vector<8x256xf32>
    %13 = tpu.matmul %9, %12, %cst_10 {dimension_numbers = #tpu.dot_dimension_numbers<[1], [0], [0], [1], [0, 0, 1, 1], [], []>} : vector<8x64xbf16>, vector<64x256xbf16>, vector<8x256xf32> -> vector<8x256xf32>
    %14 = arith.addf %11, %13 : vector<8x256xf32>
    %cst_11 = arith.constant 0.000000e+00 : f32
    %15 = vector.broadcast %cst_11 : f32 to vector<8x256xf32>
    %16 = arith.maximumf %0, %15 : vector<8x256xf32>
    %17 = arith.mulf %0, %14 : vector<8x256xf32>
    %18 = arith.subf %16, %17 : vector<8x256xf32>
    %19 = math.absf %0 : vector<8x256xf32>
    %cst_12 = arith.constant 0.000000e+00 : f32
    %20 = vector.broadcast %cst_12 : f32 to vector<8x256xf32>
    %21 = arith.subf %20, %19 : vector<8x256xf32>
    %22 = math.exp %21 : vector<8x256xf32>
    %cst_13 = arith.constant 1.000000e+00 : f32
    %23 = vector.broadcast %cst_13 : f32 to vector<8x256xf32>
    %24 = arith.addf %23, %22 : vector<8x256xf32>
    %25 = math.log %24 : vector<8x256xf32>
    %26 = arith.addf %18, %25 : vector<8x256xf32>
    %cst_14 = arith.constant dense<0.000000e+00> : vector<256xf32>
    %27 = vector.multi_reduction <add>, %26, %cst_14 [0] : vector<8x256xf32> to vector<256xf32>
    %28 = vector.shape_cast %27 : vector<256xf32> to vector<1x256xf32>
    %c0_15 = arith.constant 0 : index
    %c0_16 = arith.constant 0 : index
    %29 = vector.load %arg6[%c0_15, %c0_16] : memref<1x256xf32, #tpu.memory_space<vmem>>, vector<1x256xf32>
    tpu.vector_store %arg6[%c0_15, %c0_16], %28 {strides = array<i32>} : memref<1x256xf32, #tpu.memory_space<vmem>>, vector<1x256xf32>,
    return
  }
  func.func @transform_0(%arg0: i32) -> (i32, i32) {
    %c0_i32 = arith.constant 0 : i32
    %c0_i32_0 = arith.constant 0 : i32
    return %arg0, %c0_i32 : i32, i32
  }
  func.func @transform_1(%arg0: i32) -> (i32, i32) {
    %c0_i32 = arith.constant 0 : i32
    %c0_i32_0 = arith.constant 0 : i32
    return %arg0, %c0_i32 : i32, i32
  }
  func.func @transform_2(%arg0: i32) -> (i32, i32) {
    %c0_i32 = arith.constant 0 : i32
    %c0_i32_0 = arith.constant 0 : i32
    return %arg0, %c0_i32 : i32, i32
  }
  func.func @transform_3(%arg0: i32) -> (i32, i32) {
    %c0_i32 = arith.constant 0 : i32
    %c0_i32_0 = arith.constant 0 : i32
    %c0_i32_1 = arith.constant 0 : i32
    return %c0_i32, %c0_i32_0 : i32, i32
  }
  func.func @transform_4(%arg0: i32) -> (i32, i32) {
    %c0_i32 = arith.constant 0 : i32
    %c0_i32_0 = arith.constant 0 : i32
    %c0_i32_1 = arith.constant 0 : i32
    return %c0_i32, %c0_i32_0 : i32, i32
  }
  func.func @transform_5(%arg0: i32) -> (i32, i32) {
    %c0_i32 = arith.constant 0 : i32
    %c0_i32_0 = arith.constant 0 : i32
    return %arg0, %c0_i32 : i32, i32
  }
}

</mosaic_0001>

<bundles_post_ra>
// kernel: tpu_custom_call.1
= control target key start
LH: loop header
LB: loop body
LE: loop exit
PB: predicated region body
PF: predicated region fallthrough
CT: control target
= control target key end

     0   :  { %10 = vsyncpa [#allocation3], 0  ;;  %s687_s0 = inlined_call_operand.hbm [shape: f32[8,256], index: 0, kind: input, shape index: {}]   ;;  %s688_s1 = inlined_call_operand.hbm [shape: f32[8,64], index: 1, kind: input, shape index: {}]   ;;  %s689_s2 = inlined_call_operand.hbm [shape: f32[8,64], index: 2, kind: input, shape index: {}]   ;;  %s690_s3 = inlined_call_operand.hbm [shape: bf16[64,256], index: 3, kind: input, shape index: {}]   ;;  %s691_s4 = inlined_call_operand.hbm [shape: bf16[64,256], index: 4, kind: input, shape index: {}]   ;;  %s692_s5 = inlined_call_operand.hbm [shape: f32[1,256], index: 5, kind: output, shape index: {}]  }
   0x1   :  { %11 = vsyncpa [#allocation6], 0 }
   0x2   :  { %12 = vsyncpa [#allocation9], 0 }
   0x3   :  { %13 = vsyncpa [#allocation4], 0  ;;  %s562_s18 = smov [#allocation5]   ;;  %s563_s20 = smov [#allocation8]  }
   0x4   :  { %s30_s19 = sshll.u32 %s562_s18, 4  ;;  %s49_s21 = sshll.u32 %s563_s20, 4  ;;  %s31_s19 = int_to_ptr.vmem [resolvable:$true] %s30_s19  ;;  %s602_s21 = int_to_ptr.vmem [resolvable:$true] %s49_s21 }
   0x5   :  { %s422_s24 = scalar_lea.hbm %s688_s1, 128 }
   0x6   :  { %p423_p0 = scmp.ne.s32.totalorder %s688_s1, %s422_s24  ;;  %p426_p1 = scmp.lt.u32.totalorder %s422_s24, %s688_s1 }
   0x8   :  { %p428_p2 = pnand %p426_p1, %p423_p0 }
   0xa   :  { %431 = shalt.err (!%p428_p2)
}
   0xb   :  { %s432_s29 = scalar_lea.vmem %s31_s19, 128  ;;  %p437_p4 = scmp.lt.s32.totalorder %s31_s19, %s31_s19 }
   0xc   :  { %p433_p3 = scmp.ne.s32.totalorder %s31_s19, %s432_s29  ;;  %p438_p5 = scmp.lt.s32.totalorder %s432_s29, %s432_s29 }
   0xe   :  { %p439_p6 = por %p438_p5, %p437_p4 }
  0x10   :  { %p440_p7 = pnand %p439_p6, %p433_p3 }
  0x12   :  { %443 = shalt.err (!%p440_p7)
}
  0x13   :  { %33 = dma.hbm_to_vmem [thread:$0]  %s688_s1, 128, %s31_s19, [#allocation6]  }
  0x14   :  { %s444_s9 = scalar_lea.hbm %s690_s3, 1024 }
  0x15   :  { %p445_p8 = scmp.ne.s32.totalorder %s690_s3, %s444_s9  ;;  %p448_p9 = scmp.lt.u32.totalorder %s444_s9, %s690_s3 }
  0x17   :  { %p450_p10 = pnand %p448_p9, %p445_p8 }
  0x19   :  { %453 = shalt.err (!%p450_p10)
}
  0x1a   :  { %s454_s14 = scalar_lea.vmem %s602_s21, 1024  ;;  %p459_p12 = scmp.lt.s32.totalorder %s602_s21, %s602_s21 }
  0x1b   :  { %p455_p11 = scmp.ne.s32.totalorder %s602_s21, %s454_s14  ;;  %p460_p13 = scmp.lt.s32.totalorder %s454_s14, %s454_s14 }
  0x1d   :  { %p461_p0 = por %p460_p13, %p459_p12 }
  0x1f   :  { %p462_p1 = pnand %p461_p0, %p455_p11 }
  0x21   :  { %465 = shalt.err (!%p462_p1)
}
  0x22   :  { %s564_s1 = smov 128   ;;  %s565_s15 = smov 8  }
  0x23   :  { %55 = dma.hbm_to_vmem [thread:$0]  %s690_s3, 1024, %s602_s21, [#allocation9], %s564_s1, %s564_s1, %s565_s15  }
  0x24   :  { %s566_s18 = smov [#allocation2]   ;;  %s567_s20 = smov [#allocation7]  }
  0x25   :  { %s20_s19 = sshll.u32 %s566_s18, 4  ;;  %s40_s22 = sshll.u32 %s567_s20, 4  ;;  %s21_s19 = int_to_ptr.vmem [resolvable:$true] %s20_s19  ;;  %s41_s22 = int_to_ptr.vmem [resolvable:$true] %s40_s22 }
  0x26   :  { %s466_s25 = scalar_lea.hbm %s687_s0, 256 }
  0x27   :  { %p467_p2 = scmp.ne.s32.totalorder %s687_s0, %s466_s25  ;;  %p470_p3 = scmp.lt.u32.totalorder %s466_s25, %s687_s0 }
  0x29   :  { %p472_p4 = pnand %p470_p3, %p467_p2 }
  0x2b   :  { %475 = shalt.err (!%p472_p4)
}
  0x2c   :  { %s476_s3 = scalar_lea.vmem %s21_s19, 256  ;;  %p481_p6 = scmp.lt.s32.totalorder %s21_s19, %s21_s19 }
  0x2d   :  { %p477_p5 = scmp.ne.s32.totalorder %s21_s19, %s476_s3  ;;  %p482_p7 = scmp.lt.s32.totalorder %s476_s3, %s476_s3 }
  0x2f   :  { %p483_p8 = por %p482_p7, %p481_p6 }
  0x31   :  { %p484_p9 = pnand %p483_p8, %p477_p5 }
  0x33   :  { %487 = shalt.err (!%p484_p9)
}
  0x34   :  { %23 = dma.hbm_to_vmem [thread:$0]  %s687_s0, 256, %s21_s19, [#allocation3]  }
  0x35   :  { %s488_s8 = scalar_lea.hbm %s689_s2, 128 }
  0x36   :  { %p489_p10 = scmp.ne.s32.totalorder %s689_s2, %s488_s8  ;;  %p492_p11 = scmp.lt.u32.totalorder %s488_s8, %s689_s2 }
  0x38   :  { %p494_p12 = pnand %p492_p11, %p489_p10 }
  0x3a   :  { %497 = shalt.err (!%p494_p12)
}
  0x3b   :  { %s498_s13 = scalar_lea.vmem %s41_s22, 128  ;;  %p503_p0 = scmp.lt.s32.totalorder %s41_s22, %s41_s22 }
  0x3c   :  { %p499_p13 = scmp.ne.s32.totalorder %s41_s22, %s498_s13  ;;  %p504_p1 = scmp.lt.s32.totalorder %s498_s13, %s498_s13 }
  0x3e   :  { %p505_p2 = por %p504_p1, %p503_p0 }
  0x40   :  { %p506_p3 = pnand %p505_p2, %p499_p13 }
  0x42   :  { %509 = shalt.err (!%p506_p3)
}
  0x43   :  { %43 = dma.hbm_to_vmem [thread:$0]  %s689_s2, 128, %s41_s22, [#allocation6]  }
  0x44   :  { %s568_s16 = smov [#allocation10]   ;;  %s510_s20 = scalar_lea.hbm %s691_s4, 1024 }
  0x45   :  { %s61_s17 = sshll.u32 %s568_s16, 4  ;;  %p511_p4 = scmp.ne.s32.totalorder %s691_s4, %s510_s20  ;;  %s62_s17 = int_to_ptr.vmem [resolvable:$true] %s61_s17 }
  0x46   :  { %p514_p5 = scmp.lt.u32.totalorder %s510_s20, %s691_s4 }
  0x48   :  { %p516_p6 = pnand %p514_p5, %p511_p4 }
  0x4a   :  { %519 = shalt.err (!%p516_p6)
}
  0x4b   :  { %s520_s27 = scalar_lea.vmem %s62_s17, 1024  ;;  %p525_p8 = scmp.lt.s32.totalorder %s62_s17, %s62_s17 }
  0x4c   :  { %p521_p7 = scmp.ne.s32.totalorder %s62_s17, %s520_s27  ;;  %p526_p9 = scmp.lt.s32.totalorder %s520_s27, %s520_s27 }
  0x4e   :  { %p527_p10 = por %p526_p9, %p525_p8 }
  0x50   :  { %p528_p11 = pnand %p527_p10, %p521_p7 }
  0x52   :  { %531 = shalt.err (!%p528_p11)
}
  0x53   :  { %67 = dma.hbm_to_vmem [thread:$0]  %s691_s4, 1024, %s62_s17, [#allocation9], %s564_s1, %s564_s1, %s565_s15  }
  0x54   :  { %554 = dma.done.wait [#allocation3], 256  }
  0x55   :  { %555 = vsyncadd [#allocation3], 4294967040 }
  0x56   :  { %556 = dma.done.wait [#allocation6], 256  }
  0x57   :  { %557 = vsyncadd [#allocation6], 4294967040 }
  0x58   :  { %558 = dma.done.wait [#allocation9], 2048  }
  0x59   :  { %559 = vsyncadd [#allocation9], 4294965248  ;;  %v569_v0 = vmov 0   ;;  %v386_v1 = vld [vmem:[#allocation8 + $0x4] ss:$8 sps:$4 sm:$0xff]   ;;  %v86_v16 = vld [vmem:[#allocation5] sm:$0xff] }
  0x5a   :  { %272 = vmatprep.mubr.bf16.mxu0 %v569_v0  ;;  %188 = vmatprep.mubr.bf16.mxu1 %v569_v0  ;;  %v388_v2 = vld [vmem:[#allocation8] ss:$8 sps:$4 sm:$0xff]   ;;  %v389_v3 = vld [vmem:[#allocation10 + $0x4] ss:$8 sps:$4 sm:$0xff]   ;;  %v392_v5 = vld [vmem:[#allocation8 + $0x14] ss:$8 sps:$4 sm:$0xff]   ;;  %v87_v20 = vpack.c.bf16 %v86_v16, %v86_v16 }
  0x5b   :  { %240 = vmatprep.subr.bf16.mxu0 %v386_v1  ;;  %v391_v4 = vld [vmem:[#allocation10] ss:$8 sps:$4 sm:$0xff]   ;;  %v394_v6 = vld [vmem:[#allocation8 + $0x10] ss:$8 sps:$4 sm:$0xff]   ;;  %156 = vmatprep.subr.bf16.mxu1 %v389_v3  ;;  %v395_v7 = vld [vmem:[#allocation10 + $0x14] ss:$8 sps:$4 sm:$0xff]   ;;  %v321_v1 = vlaneseq }
  0x5c   :  { %241 = vmatpush1.bf16.msra.mxu0 %v388_v2  ;;  %157 = vmatpush1.bf16.msra.mxu1 %v391_v4  ;;  %v397_v8 = vld [vmem:[#allocation10 + $0x10] ss:$8 sps:$4 sm:$0xff]   ;;  %v398_v9 = vld [vmem:[#allocation8 + $0x24] ss:$8 sps:$4 sm:$0xff]   ;;  %v400_v10 = vld [vmem:[#allocation8 + $0x20] ss:$8 sps:$4 sm:$0xff]  }
  0x5d   :  { %242 = vmatprep.subr.bf16.mxu0 %v392_v5  ;;  %158 = vmatprep.subr.bf16.mxu1 %v395_v7  ;;  %v401_v11 = vld [vmem:[#allocation10 + $0x24] ss:$8 sps:$4 sm:$0xff]   ;;  %v404_v12 = vld [vmem:[#allocation8 + $0x34] ss:$8 sps:$4 sm:$0xff]   ;;  %v403_v13 = vld [vmem:[#allocation10 + $0x20] ss:$8 sps:$4 sm:$0xff]  }
  0x5e   :  { %v407_v14 = vld [vmem:[#allocation10 + $0x34] ss:$8 sps:$4 sm:$0xff]   ;;  %v406_v15 = vld [vmem:[#allocation8 + $0x30] ss:$8 sps:$4 sm:$0xff]   ;;  %vm152_vm0 = vcmask 523264   ;;  %v84_v25 = vld [vmem:[#allocation2] sm:$0xff] }
  0x5f   :  { %v88_v17 = vld [vmem:[#allocation7] sm:$0xff]  ;;  %v85_v26 = vld [vmem:[#allocation2 + $0x8] sm:$0xff]  ;;  %v287_v27 = vand.u32 2147483647, %v84_v25  ;;  %v281_v45 = vmax.f32 %v84_v25, 0.0  ;;  %v322_v7 = vshrl.u32 %v321_v1, 7 }
  0x60   :  { %243 = vmatpush1.bf16.msra.mxu0 %v394_v6  ;;  %159 = vmatpush1.bf16.msra.mxu1 %v397_v8  ;;  %v355_v18 = vmul.f32 -1.442695, %v88_v17  ;;  %v409_v19 = vld [vmem:[#allocation10 + $0x30] ss:$8 sps:$4 sm:$0xff]   ;;  %v288_v28 = vand.u32 2147483647, %v85_v26 }
  0x61   :  { %244 = vmatprep.subr.bf16.mxu0 %v398_v9  ;;  %160 = vmatprep.subr.bf16.mxu1 %v401_v11  ;;  %v289_v29 = vsub.f32 0.0, %v287_v27  ;;  %v282_v48 = vmax.f32 %v85_v26, 0.0  ;;  %v570_v63 = vmov 1966171168   ;;  %s571_s4 = smov [#allocation11]   ;;  %vm335_vm1 = vcmp.lt.s32.totalorder %v321_v1, 256 }
  0x62   :  { %410 = vpow2.f32 %v355_v18  ;;  %v290_v30 = vsub.f32 0.0, %v288_v28  ;;  %v319_v0 = vunpack.c.l.s4 %v570_v63  ;;  %s344_s1 = sshll.u32 %s571_s4, 4  ;;  %s345_s1 = int_to_ptr.vmem [resolvable:$true] %s344_s1 }
  0x63   :  { %v291_v31 = vmul.f32 1.442695, %v289_v29  ;;  %s532_s15 = scalar_lea.vmem %s345_s1, 32  ;;  %p537_p13 = scmp.lt.s32.totalorder %s345_s1, %s345_s1 }
  0x64   :  { %245 = vmatpush1.bf16.msra.mxu0 %v400_v10  ;;  %161 = vmatpush1.bf16.msra.mxu1 %v403_v13  ;;  %v293_v32 = vmul.f32 1.442695, %v290_v30  ;;  %v320_v6 = vunpack.c.0.s8 %v319_v0  ;;  %p533_p12 = scmp.ne.s32.totalorder %s345_s1, %s532_s15  ;;  %p538_p0 = scmp.lt.s32.totalorder %s532_s15, %s532_s15 }
  0x65   :  { %246 = vmatprep.subr.bf16.mxu0 %v404_v12  ;;  %162 = vmatprep.subr.bf16.mxu1 %v407_v14 }
  0x66   :  { %v323_v12 = vsub.s32 %v320_v6, %v322_v7  ;;  %p539_p1 = por %p538_p0, %p537_p13 }
  0x68   :  { %247 = vmatpush1.bf16.msra.mxu0 %v406_v15  ;;  %163 = vmatpush1.bf16.msra.mxu1 %v409_v19  ;;  %p540_p2 = pnand %p539_p1, %p533_p12 }
  0x6b   :  { %373 = vmatmul.mubr.msk.bf16.vlgmr.msra.gmra.mrb[0].mxu0 %vm152_vm0, %v87_v20 }
  0x6c   :  { %v411_v21 = vpop.eup %410 }
  0x6d   :  { %v92_v22 = vadd.f32 1.0, %v411_v21 }
  0x6f   :  { %412 = vrcp.f32 %v92_v22 }
  0x70   :  { %414 = vpow2.f32 %v291_v31 }
  0x71   :  { %416 = vpow2.f32 %v293_v32 }
  0x79   :  { %v413_v23 = vpop.eup %412 }
  0x7a   :  { %v95_v24 = vpack.c.bf16 %v413_v23, %v413_v23  ;;  %v415_v37 = vpop.eup %414 }
  0x7b   :  { %v417_v38 = vpop.eup %416  ;;  %v295_v39 = vadd.f32 1.0, %v415_v37 }
  0x7c   :  { %364 = vmatmul.mubr.msk.bf16.vlgmr.msra.gmra.mrb[0].mxu1 %vm152_vm0, %v95_v24  ;;  %v296_v40 = vadd.f32 1.0, %v417_v38 }
  0x7d   :  { %418 = vlog2.f32 %v295_v39 }
  0x7e   :  { %420 = vlog2.f32 %v296_v40 }
  0x87   :  { %v419_v41 = vpop.eup %418 }
  0x88   :  { %v421_v43 = vpop.eup %420  ;;  %v298_v51 = vmul.f32 0.6931472, %v419_v41 }
  0x89   :  { %v300_v54 = vmul.f32 0.6931472, %v421_v43 }
 0x13e   :  { %v274_v33 = vpop.f32.mrb[0].mxu0 }
 0x13f   :  { %v276_v34 = vpop.f32.mrb[1].mxu0 }
 0x140   :  { %v278_v35 = vpop.f32.mrb[2].mxu0 }
 0x141   :  { %v279_v36 = vpop.f32.mrb[3].mxu0 }
 0x14f   :  { %v190_v42 = vpop.f32.mrb[0].mxu1 }
 0x150   :  { %v275_v44 = vadd.f32 %v274_v33, %v190_v42  ;;  %v192_v46 = vpop.f32.mrb[1].mxu1 }
 0x151   :  { %v277_v47 = vadd.f32 %v276_v34, %v192_v46  ;;  %v194_v49 = vpop.f32.mrb[2].mxu1 }
 0x152   :  { %v283_v50 = vmul.f32 %v275_v44, %v84_v25  ;;  %v195_v52 = vpop.f32.mrb[3].mxu1 }
 0x153   :  { %v284_v53 = vmul.f32 %v277_v47, %v85_v26 }
 0x154   :  { %v285_v55 = vsub.f32 %v281_v45, %v283_v50 }
 0x155   :  { %v286_v56 = vsub.f32 %v282_v48, %v284_v53 }
 0x156   :  { %v301_v57 = vadd.f32 %v298_v51, %v285_v55 }
 0x157   :  { %v302_v58 = vadd.f32 %v300_v54, %v286_v56 }
 0x158   :  { %v303_v59 = vrot.slane %v301_v57, 4 }
 0x159   :  { %v309_v60 = vrot.slane %v302_v58, 4 }
 0x15a   :  { %v304_v61 = vadd.f32 %v303_v59, %v301_v57 }
 0x15b   :  { %v310_v62 = vadd.f32 %v309_v60, %v302_v58 }
 0x15c   :  { %v305_v2 = vrot.slane %v304_v61, 2 }
 0x15d   :  { %v311_v3 = vrot.slane %v310_v62, 2 }
 0x15e   :  { %v306_v4 = vadd.f32 %v305_v2, %v304_v61 }
 0x15f   :  { %v312_v5 = vadd.f32 %v311_v3, %v310_v62 }
 0x160   :  { %v307_v8 = vrot.slane %v306_v4, 1 }
 0x161   :  { %v313_v9 = vrot.slane %v312_v5, 1 }
 0x162   :  { %v308_v10 = vadd.f32 %v307_v8, %v306_v4 }
 0x163   :  { %v314_v11 = vadd.f32 %v313_v9, %v312_v5 }
 0x165   :  { %v317_v13 = vcombine.low %v308_v10, %v314_v11 }
 0x167   :  { %v324_v14 = vrot.slane %v317_v13, %v323_v12 }
 0x169   :  { %v331_v15 = vrot.slane %v324_v14, %v323_v12 }
 0x16b   :  { %337 = vst.msk [vmem:[#allocation11] sm:$0x3] %vm335_vm1, %v331_v15 }
 0x16c   :  { %543 = shalt.err (!%p540_p2)
}
 0x16d   :  { %s544_s3 = scalar_lea.hbm %s692_s5, 32 }
 0x16e   :  { %p545_p3 = scmp.ne.s32.totalorder %s692_s5, %s544_s3  ;;  %p548_p4 = scmp.lt.u32.totalorder %s544_s3, %s692_s5 }
 0x170   :  { %p550_p5 = pnand %p548_p4, %p545_p3 }
 0x172   :  { %553 = shalt.err (!%p550_p5)
}
 0x173   :  { %347 = dma.vmem_to_hbm [thread:$0]  %s345_s1, 32, %s692_s5, [#allocation4]  }
 0x174   :  { %560 = dma.done.wait [#allocation4], 32  }
 0x175   :  { %561 = vsyncadd [#allocation4], 4294967264 }
 0x176   :  { %351 = vsyncpa [#allocation3], 1 }
 0x177   :  { %352 = vsyncpa [#allocation6], 1 }
 0x178   :  { %353 = vsyncpa [#allocation9], 1 }
 0x179   :  { %354 = vsyncpa [#allocation4], 1 }

// kernel: tpu_custom_call.1
= control target key start
LH: loop header
LB: loop body
LE: loop exit
PB: predicated region body
PF: predicated region fallthrough
CT: control target
= control target key end

     0   :  { %10 = vsyncpa [#allocation3], 0  ;;  %s687_s0 = inlined_call_operand.hbm [shape: f32[8,256], index: 0, kind: input, shape index: {}]   ;;  %s688_s1 = inlined_call_operand.hbm [shape: f32[8,64], index: 1, kind: input, shape index: {}]   ;;  %s689_s2 = inlined_call_operand.hbm [shape: f32[8,64], index: 2, kind: input, shape index: {}]   ;;  %s690_s3 = inlined_call_operand.hbm [shape: bf16[64,256], index: 3, kind: input, shape index: {}]   ;;  %s691_s4 = inlined_call_operand.hbm [shape: bf16[64,256], index: 4, kind: input, shape index: {}]   ;;  %s692_s5 = inlined_call_operand.hbm [shape: f32[1,256], index: 5, kind: output, shape index: {}]  }
   0x1   :  { %11 = vsyncpa [#allocation6], 0 }
   0x2   :  { %12 = vsyncpa [#allocation9], 0 }
   0x3   :  { %13 = vsyncpa [#allocation4], 0  ;;  %s562_s18 = smov [#allocation5]   ;;  %s563_s20 = smov [#allocation8]  }
   0x4   :  { %s30_s19 = sshll.u32 %s562_s18, 4  ;;  %s49_s21 = sshll.u32 %s563_s20, 4  ;;  %s31_s19 = int_to_ptr.vmem [resolvable:$true] %s30_s19  ;;  %s602_s21 = int_to_ptr.vmem [resolvable:$true] %s49_s21 }
   0x5   :  { %s422_s24 = scalar_lea.hbm %s688_s1, 128 }
   0x6   :  { %p423_p0 = scmp.ne.s32.totalorder %s688_s1, %s422_s24  ;;  %p426_p1 = scmp.lt.u32.totalorder %s422_s24, %s688_s1 }
   0x8   :  { %p428_p2 = pnand %p426_p1, %p423_p0 }
   0xa   :  { %431 = shalt.err (!%p428_p2)
}
   0xb   :  { %s432_s29 = scalar_lea.vmem %s31_s19, 128  ;;  %p437_p4 = scmp.lt.s32.totalorder %s31_s19, %s31_s19 }
   0xc   :  { %p433_p3 = scmp.ne.s32.totalorder %s31_s19, %s432_s29  ;;  %p438_p5 = scmp.lt.s32.totalorder %s432_s29, %s432_s29 }
   0xe   :  { %p439_p6 = por %p438_p5, %p437_p4 }
  0x10   :  { %p440_p7 = pnand %p439_p6, %p433_p3 }
  0x12   :  { %443 = shalt.err (!%p440_p7)
}
  0x13   :  { %33 = dma.hbm_to_vmem [thread:$0]  %s688_s1, 128, %s31_s19, [#allocation6]  }
  0x14   :  { %s444_s9 = scalar_lea.hbm %s690_s3, 1024 }
  0x15   :  { %p445_p8 = scmp.ne.s32.totalorder %s690_s3, %s444_s9  ;;  %p448_p9 = scmp.lt.u32.totalorder %s444_s9, %s690_s3 }
  0x17   :  { %p450_p10 = pnand %p448_p9, %p445_p8 }
  0x19   :  { %453 = shalt.err (!%p450_p10)
}
  0x1a   :  { %s454_s14 = scalar_lea.vmem %s602_s21, 1024  ;;  %p459_p12 = scmp.lt.s32.totalorder %s602_s21, %s602_s21 }
  0x1b   :  { %p455_p11 = scmp.ne.s32.totalorder %s602_s21, %s454_s14  ;;  %p460_p13 = scmp.lt.s32.totalorder %s454_s14, %s454_s14 }
  0x1d   :  { %p461_p0 = por %p460_p13, %p459_p12 }
  0x1f   :  { %p462_p1 = pnand %p461_p0, %p455_p11 }
  0x21   :  { %465 = shalt.err (!%p462_p1)
}
  0x22   :  { %s564_s1 = smov 128   ;;  %s565_s15 = smov 8  }
  0x23   :  { %55 = dma.hbm_to_vmem [thread:$0]  %s690_s3, 1024, %s602_s21, [#allocation9], %s564_s1, %s564_s1, %s565_s15  }
  0x24   :  { %s566_s18 = smov [#allocation2]   ;;  %s567_s20 = smov [#allocation7]  }
  0x25   :  { %s20_s19 = sshll.u32 %s566_s18, 4  ;;  %s40_s22 = sshll.u32 %s567_s20, 4  ;;  %s21_s19 = int_to_ptr.vmem [resolvable:$true] %s20_s19  ;;  %s41_s22 = int_to_ptr.vmem [resolvable:$true] %s40_s22 }
  0x26   :  { %s466_s25 = scalar_lea.hbm %s687_s0, 256 }
  0x27   :  { %p467_p2 = scmp.ne.s32.totalorder %s687_s0, %s466_s25  ;;  %p470_p3 = scmp.lt.u32.totalorder %s466_s25, %s687_s0 }
  0x29   :  { %p472_p4 = pnand %p470_p3, %p467_p2 }
  0x2b   :  { %475 = shalt.err (!%p472_p4)
}
  0x2c   :  { %s476_s3 = scalar_lea.vmem %s21_s19, 256  ;;  %p481_p6 = scmp.lt.s32.totalorder %s21_s19, %s21_s19 }
  0x2d   :  { %p477_p5 = scmp.ne.s32.totalorder %s21_s19, %s476_s3  ;;  %p482_p7 = scmp.lt.s32.totalorder %s476_s3, %s476_s3 }
  0x2f   :  { %p483_p8 = por %p482_p7, %p481_p6 }
  0x31   :  { %p484_p9 = pnand %p483_p8, %p477_p5 }
  0x33   :  { %487 = shalt.err (!%p484_p9)
}
  0x34   :  { %23 = dma.hbm_to_vmem [thread:$0]  %s687_s0, 256, %s21_s19, [#allocation3]  }
  0x35   :  { %s488_s8 = scalar_lea.hbm %s689_s2, 128 }
  0x36   :  { %p489_p10 = scmp.ne.s32.totalorder %s689_s2, %s488_s8  ;;  %p492_p11 = scmp.lt.u32.totalorder %s488_s8, %s689_s2 }
  0x38   :  { %p494_p12 = pnand %p492_p11, %p489_p10 }
  0x3a   :  { %497 = shalt.err (!%p494_p12)
}
  0x3b   :  { %s498_s13 = scalar_lea.vmem %s41_s22, 128  ;;  %p503_p0 = scmp.lt.s32.totalorder %s41_s22, %s41_s22 }
  0x3c   :  { %p499_p13 = scmp.ne.s32.totalorder %s41_s22, %s498_s13  ;;  %p504_p1 = scmp.lt.s32.totalorder %s498_s13, %s498_s13 }
  0x3e   :  { %p505_p2 = por %p504_p1, %p503_p0 }
  0x40   :  { %p506_p3 = pnand %p505_p2, %p499_p13 }
  0x42   :  { %509 = shalt.err (!%p506_p3)
}
  0x43   :  { %43 = dma.hbm_to_vmem [thread:$0]  %s689_s2, 128, %s41_s22, [#allocation6]  }
  0x44   :  { %s568_s16 = smov [#allocation10]   ;;  %s510_s20 = scalar_lea.hbm %s691_s4, 1024 }
  0x45   :  { %s61_s17 = sshll.u32 %s568_s16, 4  ;;  %p511_p4 = scmp.ne.s32.totalorder %s691_s4, %s510_s20  ;;  %s62_s17 = int_to_ptr.vmem [resolvable:$true] %s61_s17 }
  0x46   :  { %p514_p5 = scmp.lt.u32.totalorder %s510_s20, %s691_s4 }
  0x48   :  { %p516_p6 = pnand %p514_p5, %p511_p4 }
  0x4a   :  { %519 = shalt.err (!%p516_p6)
}
  0x4b   :  { %s520_s27 = scalar_lea.vmem %s62_s17, 1024  ;;  %p525_p8 = scmp.lt.s32.totalorder %s62_s17, %s62_s17 }
  0x4c   :  { %p521_p7 = scmp.ne.s32.totalorder %s62_s17, %s520_s27  ;;  %p526_p9 = scmp.lt.s32.totalorder %s520_s27, %s520_s27 }
  0x4e   :  { %p527_p10 = por %p526_p9, %p525_p8 }
  0x50   :  { %p528_p11 = pnand %p527_p10, %p521_p7 }
  0x52   :  { %531 = shalt.err (!%p528_p11)
}
  0x53   :  { %67 = dma.hbm_to_vmem [thread:$0]  %s691_s4, 1024, %s62_s17, [#allocation9], %s564_s1, %s564_s1, %s565_s15  }
  0x54   :  { %554 = dma.done.wait [#allocation3], 256  }
  0x55   :  { %555 = vsyncadd [#allocation3], 4294967040 }
  0x56   :  { %556 = dma.done.wait [#allocation6], 256  }
  0x57   :  { %557 = vsyncadd [#allocation6], 4294967040 }
  0x58   :  { %558 = dma.done.wait [#allocation9], 2048  }
  0x59   :  { %559 = vsyncadd [#allocation9], 4294965248  ;;  %v569_v0 = vmov 0   ;;  %v386_v1 = vld [vmem:[#allocation8 + $0x4] ss:$8 sps:$4 sm:$0xff]   ;;  %v86_v16 = vld [vmem:[#allocation5] sm:$0xff] }
  0x5a   :  { %272 = vmatprep.mubr.bf16.mxu0 %v569_v0  ;;  %188 = vmatprep.mubr.bf16.mxu1 %v569_v0  ;;  %v388_v2 = vld [vmem:[#allocation8] ss:$8 sps:$4 sm:$0xff]   ;;  %v389_v3 = vld [vmem:[#allocation10 + $0x4] ss:$8 sps:$4 sm:$0xff]   ;;  %v392_v5 = vld [vmem:[#allocation8 + $0x14] ss:$8 sps:$4 sm:$0xff]   ;;  %v87_v20 = vpack.c.bf16 %v86_v16, %v86_v16 }
  0x5b   :  { %240 = vmatprep.subr.bf16.mxu0 %v386_v1  ;;  %v391_v4 = vld [vmem:[#allocation10] ss:$8 sps:$4 sm:$0xff]   ;;  %v394_v6 = vld [vmem:[#allocation8 + $0x10] ss:$8 sps:$4 sm:$0xff]   ;;  %156 = vmatprep.subr.bf16.mxu1 %v389_v3  ;;  %v395_v7 = vld [vmem:[#allocation10 + $0x14] ss:$8 sps:$4 sm:$0xff]   ;;  %v321_v1 = vlaneseq }
  0x5c   :  { %241 = vmatpush1.bf16.msra.mxu0 %v388_v2  ;;  %157 = vmatpush1.bf16.msra.mxu1 %v391_v4  ;;  %v397_v8 = vld [vmem:[#allocation10 + $0x10] ss:$8 sps:$4 sm:$0xff]   ;;  %v398_v9 = vld [vmem:[#allocation8 + $0x24] ss:$8 sps:$4 sm:$0xff]   ;;  %v400_v10 = vld [vmem:[#allocation8 + $0x20] ss:$8 sps:$4 sm:$0xff]  }
  0x5d   :  { %242 = vmatprep.subr.bf16.mxu0 %v392_v5  ;;  %158 = vmatprep.subr.bf16.mxu1 %v395_v7  ;;  %v401_v11 = vld [vmem:[#allocation10 + $0x24] ss:$8 sps:$4 sm:$0xff]   ;;  %v404_v12 = vld [vmem:[#allocation8 + $0x34] ss:$8 sps:$4 sm:$0xff]   ;;  %v403_v13 = vld [vmem:[#allocation10 + $0x20] ss:$8 sps:$4 sm:$0xff]  }
  0x5e   :  { %v407_v14 = vld [vmem:[#allocation10 + $0x34] ss:$8 sps:$4 sm:$0xff]   ;;  %v406_v15 = vld [vmem:[#allocation8 + $0x30] ss:$8 sps:$4 sm:$0xff]   ;;  %vm152_vm0 = vcmask 523264   ;;  %v84_v25 = vld [vmem:[#allocation2] sm:$0xff] }
  0x5f   :  { %v88_v17 = vld [vmem:[#allocation7] sm:$0xff]  ;;  %v85_v26 = vld [vmem:[#allocation2 + $0x8] sm:$0xff]  ;;  %v287_v27 = vand.u32 2147483647, %v84_v25  ;;  %v281_v45 = vmax.f32 %v84_v25, 0.0  ;;  %v322_v7 = vshrl.u32 %v321_v1, 7 }
  0x60   :  { %243 = vmatpush1.bf16.msra.mxu0 %v394_v6  ;;  %159 = vmatpush1.bf16.msra.mxu1 %v397_v8  ;;  %v355_v18 = vmul.f32 -1.442695, %v88_v17  ;;  %v409_v19 = vld [vmem:[#allocation10 + $0x30] ss:$8 sps:$4 sm:$0xff]   ;;  %v288_v28 = vand.u32 2147483647, %v85_v26 }
  0x61   :  { %244 = vmatprep.subr.bf16.mxu0 %v398_v9  ;;  %160 = vmatprep.subr.bf16.mxu1 %v401_v11  ;;  %v289_v29 = vsub.f32 0.0, %v287_v27  ;;  %v282_v48 = vmax.f32 %v85_v26, 0.0  ;;  %v570_v63 = vmov 1966171168   ;;  %s571_s4 = smov [#allocation11]   ;;  %vm335_vm1 = vcmp.lt.s32.totalorder %v321_v1, 256 }
  0x62   :  { %410 = vpow2.f32 %v355_v18  ;;  %v290_v30 = vsub.f32 0.0, %v288_v28  ;;  %v319_v0 = vunpack.c.l.s4 %v570_v63  ;;  %s344_s1 = sshll.u32 %s571_s4, 4  ;;  %s345_s1 = int_to_ptr.vmem [resolvable:$true] %s344_s1 }
  0x63   :  { %v291_v31 = vmul.f32 1.442695, %v289_v29  ;;  %s532_s15 = scalar_lea.vmem %s345_s1, 32  ;;  %p537_p13 = scmp.lt.s32.totalorder %s345_s1, %s345_s1 }
  0x64   :  { %245 = vmatpush1.bf16.msra.mxu0 %v400_v10  ;;  %161 = vmatpush1.bf16.msra.mxu1 %v403_v13  ;;  %v293_v32 = vmul.f32 1.442695, %v290_v30  ;;  %v320_v6 = vunpack.c.0.s8 %v319_v0  ;;  %p533_p12 = scmp.ne.s32.totalorder %s345_s1, %s532_s15  ;;  %p538_p0 = scmp.lt.s32.totalorder %s532_s15, %s532_s15 }
  0x65   :  { %246 = vmatprep.subr.bf16.mxu0 %v404_v12  ;;  %162 = vmatprep.subr.bf16.mxu1 %v407_v14 }
  0x66   :  { %v323_v12 = vsub.s32 %v320_v6, %v322_v7  ;;  %p539_p1 = por %p538_p0, %p537_p13 }
  0x68   :  { %247 = vmatpush1.bf16.msra.mxu0 %v406_v15  ;;  %163 = vmatpush1.bf16.msra.mxu1 %v409_v19  ;;  %p540_p2 = pnand %p539_p1, %p533_p12 }
  0x6b   :  { %373 = vmatmul.mubr.msk.bf16.vlgmr.msra.gmra.mrb[0].mxu0 %vm152_vm0, %v87_v20 }
  0x6c   :  { %v411_v21 = vpop.eup %410 }
  0x6d   :  { %v92_v22 = vadd.f32 1.0, %v411_v21 }
  0x6f   :  { %412 = vrcp.f32 %v92_v22 }
  0x70   :  { %414 = vpow2.f32 %v291_v31 }
  0x71   :  { %416 = vpow2.f32 %v293_v32 }
  0x79   :  { %v413_v23 = vpop.eup %412 }
  0x7a   :  { %v95_v24 = vpack.c.bf16 %v413_v23, %v413_v23  ;;  %v415_v37 = vpop.eup %414 }
  0x7b   :  { %v417_v38 = vpop.eup %416  ;;  %v295_v39 = vadd.f32 1.0, %v415_v37 }
  0x7c   :  { %364 = vmatmul.mubr.msk.bf16.vlgmr.msra.gmra.mrb[0].mxu1 %vm152_vm0, %v95_v24  ;;  %v296_v40 = vadd.f32 1.0, %v417_v38 }
  0x7d   :  { %418 = vlog2.f32 %v295_v39 }
  0x7e   :  { %420 = vlog2.f32 %v296_v40 }
  0x87   :  { %v419_v41 = vpop.eup %418 }
  0x88   :  { %v421_v43 = vpop.eup %420  ;;  %v298_v51 = vmul.f32 0.6931472, %v419_v41 }
  0x89   :  { %v300_v54 = vmul.f32 0.6931472, %v421_v43 }
 0x13e   :  { %v274_v33 = vpop.f32.mrb[0].mxu0 }
 0x13f   :  { %v276_v34 = vpop.f32.mrb[1].mxu0 }
 0x140   :  { %v278_v35 = vpop.f32.mrb[2].mxu0 }
 0x141   :  { %v279_v36 = vpop.f32.mrb[3].mxu0 }
 0x14f   :  { %v190_v42 = vpop.f32.mrb[0].mxu1 }
 0x150   :  { %v275_v44 = vadd.f32 %v274_v33, %v190_v42  ;;  %v192_v46 = vpop.f32.mrb[1].mxu1 }
 0x151   :  { %v277_v47 = vadd.f32 %v276_v34, %v192_v46  ;;  %v194_v49 = vpop.f32.mrb[2].mxu1 }
 0x152   :  { %v283_v50 = vmul.f32 %v275_v44, %v84_v25  ;;  %v195_v52 = vpop.f32.mrb[3].mxu1 }
 0x153   :  { %v284_v53 = vmul.f32 %v277_v47, %v85_v26 }
 0x154   :  { %v285_v55 = vsub.f32 %v281_v45, %v283_v50 }
 0x155   :  { %v286_v56 = vsub.f32 %v282_v48, %v284_v53 }
 0x156   :  { %v301_v57 = vadd.f32 %v298_v51, %v285_v55 }
 0x157   :  { %v302_v58 = vadd.f32 %v300_v54, %v286_v56 }
 0x158   :  { %v303_v59 = vrot.slane %v301_v57, 4 }
 0x159   :  { %v309_v60 = vrot.slane %v302_v58, 4 }
 0x15a   :  { %v304_v61 = vadd.f32 %v303_v59, %v301_v57 }
 0x15b   :  { %v310_v62 = vadd.f32 %v309_v60, %v302_v58 }
 0x15c   :  { %v305_v2 = vrot.slane %v304_v61, 2 }
 0x15d   :  { %v311_v3 = vrot.slane %v310_v62, 2 }
 0x15e   :  { %v306_v4 = vadd.f32 %v305_v2, %v304_v61 }
 0x15f   :  { %v312_v5 = vadd.f32 %v311_v3, %v310_v62 }
 0x160   :  { %v307_v8 = vrot.slane %v306_v4, 1 }
 0x161   :  { %v313_v9 = vrot.slane %v312_v5, 1 }
 0x162   :  { %v308_v10 = vadd.f32 %v307_v8, %v306_v4 }
 0x163   :  { %v314_v11 = vadd.f32 %v313_v9, %v312_v5 }
 0x165   :  { %v317_v13 = vcombine.low %v308_v10, %v314_v11 }
 0x167   :  { %v324_v14 = vrot.slane %v317_v13, %v323_v12 }
 0x169   :  { %v331_v15 = vrot.slane %v324_v14, %v323_v12 }
 0x16b   :  { %337 = vst.msk [vmem:[#allocation11] sm:$0x3] %vm335_vm1, %v331_v15 }
 0x16c   :  { %543 = shalt.err (!%p540_p2)
}
 0x16d   :  { %s544_s3 = scalar_lea.hbm %s692_s5, 32 }
 0x16e   :  { %p545_p3 = scmp.ne.s32.totalorder %s692_s5, %s544_s3  ;;  %p548_p4 = scmp.lt.u32.totalorder %s544_s3, %s692_s5 }
 0x170   :  { %p550_p5 = pnand %p548_p4, %p545_p3 }
 0x172   :  { %553 = shalt.err (!%p550_p5)
}
 0x173   :  { %347 = dma.vmem_to_hbm [thread:$0]  %s345_s1, 32, %s692_s5, [#allocation4]  }
 0x174   :  { %560 = dma.done.wait [#allocation4], 32  }
 0x175   :  { %561 = vsyncadd [#allocation4], 4294967264 }
 0x176   :  { %351 = vsyncpa [#allocation3], 1 }
 0x177   :  { %352 = vsyncpa [#allocation6], 1 }
 0x178   :  { %353 = vsyncpa [#allocation9], 1 }
 0x179   :  { %354 = vsyncpa [#allocation4], 1 }

</bundles_post_ra>
